<compile_context>
chip_gen: v7x
topology: tpu7x:2x2x1
jax: 0.10.0
libtpu: 0.0.40
codegen_flags: <defaults>
</compile_context>

<pallas_src>
import jax
import jax.numpy as jnp
from jax.experimental import pallas as pl
from jax.experimental.pallas import tpu as pltpu

C_IN = 6 * 128   # 768
C_OUT = 32
BN_EPS = 1e-5


def _pwconv_bn_relu_kernel(x_ref, w_ref, bias_ref, o_ref):
    # x_ref:    (Nb, C_IN, blk)  f32 activation slab (Nb images, blk pixels each)
    # w_ref:    (C_OUT, C_IN)    bf16 1x1 conv weight with BN scale folded into each row
    # bias_ref: (C_OUT, 1)       f32 folded BN bias (broadcast along lanes)
    # o_ref:    (Nb, C_OUT, blk) f32 output slab (lane-dense: last dim is the HW tile)
    w = w_ref[...]
    bias = bias_ref[...]
    for b in range(x_ref.shape[0]):                      # static unroll, Nb is small
        xb = x_ref[b].astype(jnp.bfloat16)                # in-kernel cast, hidden under DMA
        acc = jnp.dot(w, xb, preferred_element_type=jnp.float32)
        o_ref[b] = jnp.maximum(acc + bias, 0.0).astype(o_ref.dtype)


def _choose_hw_tile(HW, max_blk):
    """Return (blk, hw_padded).  Prefer a multiple-of-128 divisor of HW (no padding)."""
    best = 0
    for cand in range(128, max_blk + 1, 128):
        if HW % cand == 0:
            best = cand
    if best:
        return best, HW
    if HW <= max_blk:
        return HW, HW                      # single full-extent block (legal for any HW)
    # Rare corner: HW > max_blk and no 128-multiple divisor -> pad spatial tail to a
    # multiple of 128 (extra activation copy; only hit for odd, large feature maps).
    hw_p = ((HW + 127) // 128) * 128
    best = 128
    for cand in range(128, max_blk + 1, 128):
        if hw_p % cand == 0:
            best = cand
    return best, hw_p


def pwconv_bn_relu(x_nchw, conv_w, gamma, beta, run_mean, run_var, *,
                   max_t_hw=2048, target_step_bytes=4 << 20, max_step_bytes=8 << 20):
    """x_nchw: [N, C_IN, H, W] float32.  conv_w: [C_OUT, C_IN] (1x1 kernel squeezed)."""
    N, C, H, W = x_nchw.shape
    assert C == C_IN
    HW = H * W

    # Fold eval-mode BatchNorm into the conv weight (per-row scale) + per-channel bias.
    scale = gamma / jnp.sqrt(run_var + BN_EPS)                       # [C_OUT]
    bias = beta - run_mean * scale                                   # [C_OUT]
    w_folded = (conv_w.astype(jnp.float32) * scale[:, None]).astype(jnp.bfloat16)
    bias2 = bias.reshape(C_OUT, 1).astype(jnp.float32)

    # NCHW -> [N, C_IN, H*W]: pure reshape (merge trailing dims), no transpose.
    x = x_nchw.reshape(N, C_IN, HW)

    # --- HW tile: divisor-aligned, no activation padding in the common case ---
    blk, hw_p = _choose_hw_tile(HW, max_t_hw)
    n_blk = hw_p // blk
    if hw_p != HW:
        x = jnp.pad(x, ((0, 0), (0, 0), (0, hw_p - HW)))   # rare corner only (see above)

    # v7x megacore: if a single image yields a single block, split HW so both TCs get work.
    if N == 1 and n_blk == 1 and blk % 256 == 0:
        blk //= 2
        n_blk = 2

    # --- images per grid step: amortize the ~0.35 us per-step cost for small HW ---
    bytes_per_img_blk = C_IN * blk * 4                     # f32 activation per image per step
    divs = [d for d in range(1, N + 1) if N % d == 0]
    nb = N
    for d in divs:
        if d * bytes_per_img_blk >= target_step_bytes:
            nb = d
            break
    while nb > 1 and nb * bytes_per_img_blk > max_step_bytes:      # keep VMEM budget sane
        nb = max(d for d in divs if d < nb)
    while nb > 1 and (N // nb) * n_blk < 2:                        # keep >= 2 grid steps
        nb = max(d for d in divs if d < nb)

    out = pl.pallas_call(
        _pwconv_bn_relu_kernel,
        out_shape=jax.ShapeDtypeStruct((N, C_OUT, hw_p), jnp.float32),
        grid_spec=pltpu.PrefetchScalarGridSpec(
            num_scalar_prefetch=0,
            grid=(N // nb, n_blk),
            in_specs=[
                pl.BlockSpec((nb, C_IN, blk), lambda n, j: (n, 0, j)),  # activation slab
                pl.BlockSpec((C_OUT, C_IN), lambda n, j: (0, 0)),       # folded weight
                pl.BlockSpec((C_OUT, 1), lambda n, j: (0, 0)),          # folded bias
            ],
            out_specs=pl.BlockSpec((nb, C_OUT, blk), lambda n, j: (n, 0, j)),
        ),
        compiler_params=pltpu.CompilerParams(
            dimension_semantics=("parallel", "parallel"),
            vmem_limit_bytes=48 * 1024 * 1024),
        cost_estimate=pl.CostEstimate(
            flops=2 * N * hw_p * C_IN * C_OUT,
            transcendentals=0,
            bytes_accessed=(N * C_IN * hw_p * 4       # activation read (f32)
                            + C_OUT * C_IN * 2        # folded weight (bf16)
                            + C_OUT * 4               # bias
                            + N * C_OUT * hw_p * 4),  # output write (f32)
        ),
    )(x, w_folded, bias2)

    if hw_p != HW:
        out = out[:, :, :HW]
    return out.reshape(N, C_OUT, H, W)


def _check(out, x, conv_w, gamma, beta, run_mean, run_var):
    s = gamma / jnp.sqrt(run_var + BN_EPS)
    fold_bias = (beta - run_mean * s)[None, :, None, None]

    # Tight check: same bf16 operand quantization the kernel's MXU path sees, f32 accumulate.
    w_q = (conv_w * s[:, None]).astype(jnp.bfloat16).astype(jnp.float32)
    x_q = x.astype(jnp.bfloat16).astype(jnp.float32)
    ref = jnp.einsum("nchw,oc->nohw", x_q, w_q, precision=jax.lax.Precision.HIGHEST)
    ref = jnp.maximum(ref + fold_bias, 0.0)
    assert jnp.allclose(out, ref, atol=2e-3, rtol=2e-3)

    # Sanity check vs the pure-f32 PyTorch semantics (looser: bf16 operand rounding).
    ref32 = jnp.einsum("nchw,oc->nohw", x, conv_w, precision=jax.lax.Precision.HIGHEST)
    ref32 = jnp.maximum(ref32 * s[None, :, None, None] + fold_bias, 0.0)
    assert jnp.allclose(out, ref32, atol=5e-2, rtol=5e-2)


if __name__ == "__main__":
    key = jax.random.PRNGKey(0)
    k_x, k_w, k_g, k_b, k_m, k_v, k_x2 = jax.random.split(key, 7)

    # Deterministic synthetic parameters (Conv2d 1x1 weight, BN affine + running stats).
    conv_w = jax.random.normal(k_w, (C_OUT, C_IN), dtype=jnp.float32) * 0.02
    gamma = 1.0 + 0.1 * jax.random.normal(k_g, (C_OUT,), dtype=jnp.float32)
    beta = 0.1 * jax.random.normal(k_b, (C_OUT,), dtype=jnp.float32)
    run_mean = 0.1 * jax.random.normal(k_m, (C_OUT,), dtype=jnp.float32)
    run_var = jnp.abs(1.0 + 0.1 * jax.random.normal(k_v, (C_OUT,), dtype=jnp.float32))

    # Case 1: batch=2, 16x16 -> HW=256 (128-multiple divisor tile, one image per step).
    N, H, W = 2, 16, 16
    x = jax.random.normal(k_x, (N, C_IN, H, W), dtype=jnp.float32)
    out = jax.block_until_ready(pwconv_bn_relu(x, conv_w, gamma, beta, run_mean, run_var))
    assert out.shape == (N, C_OUT, H, W)
    _check(out, x, conv_w, gamma, beta, run_mean, run_var)

    # Case 2: batch=4, 8x8 -> HW=64 (full-extent tile, multiple images per grid step).
    N2, H2, W2 = 4, 8, 8
    x2 = jax.random.normal(k_x2, (N2, C_IN, H2, W2), dtype=jnp.float32)
    out2 = jax.block_until_ready(pwconv_bn_relu(x2, conv_w, gamma, beta, run_mean, run_var))
    assert out2.shape == (N2, C_OUT, H2, W2)
    _check(out2, x2, conv_w, gamma, beta, run_mean, run_var)

    print("KERNEL_OK")
</pallas_src>

<mosaic_0001>
module attributes {stable_mosaic.version = 11 : i64} {
  func.func @_pwconv_bn_relu_kernel(%arg0: i32, %arg1: i32, %arg2: memref<1x768x256xf32, #tpu.memory_space<vmem>>, %arg3: memref<32x768xbf16, #tpu.memory_space<vmem>>, %arg4: memref<32x1xf32, #tpu.memory_space<vmem>>, %arg5: memref<1x32x256xf32, #tpu.memory_space<vmem>>) attributes {dimension_semantics = [#tpu.dimension_semantics<parallel>, #tpu.dimension_semantics<parallel>], iteration_bounds = array<i64: 2, 1>, scalar_prefetch = 0 : i64, scratch_operands = 0 : i64, tpu.core_type = #tpu.core_type<tc>, window_params = [{transform_indices = @transform_0, window_bounds = array<i64: 1, 768, 256>}, {pipeline_mode = #tpu.pipeline_mode<synchronous>, transform_indices = @transform_1, window_bounds = array<i64: 32, 768>}, {pipeline_mode = #tpu.pipeline_mode<synchronous>, transform_indices = @transform_2, window_bounds = array<i64: 32, 1>}, {transform_indices = @transform_3, window_bounds = array<i64: 1, 32, 256>}]} {
    %c0 = arith.constant 0 : index
    %c0_0 = arith.constant 0 : index
    %0 = vector.load %arg3[%c0, %c0_0] : memref<32x768xbf16, #tpu.memory_space<vmem>>, vector<32x768xbf16>
    %c0_1 = arith.constant 0 : index
    %c0_2 = arith.constant 0 : index
    %1 = vector.load %arg4[%c0_1, %c0_2] : memref<32x1xf32, #tpu.memory_space<vmem>>, vector<32x1xf32>
    %c0_3 = arith.constant 0 : index
    %c0_4 = arith.constant 0 : index
    %c0_5 = arith.constant 0 : index
    %2 = vector.load %arg2[%c0_3, %c0_4, %c0_5] : memref<1x768x256xf32, #tpu.memory_space<vmem>>, vector<1x768x256xf32>
    %3 = vector.shape_cast %2 : vector<1x768x256xf32> to vector<768x256xf32>
    %4 = arith.truncf %3 : vector<768x256xf32> to vector<768x256xbf16>
    %cst = arith.constant dense<0.000000e+00> : vector<32x256xf32>
    %5 = tpu.matmul %0, %4, %cst {dimension_numbers = #tpu.dot_dimension_numbers<[1], [0], [0], [1], [0, 0, 1, 1], [], []>} : vector<32x768xbf16>, vector<768x256xbf16>, vector<32x256xf32> -> vector<32x256xf32>
    %6 = vector.broadcast %1 : vector<32x1xf32> to vector<32x256xf32>
    %7 = arith.addf %5, %6 : vector<32x256xf32>
    %cst_6 = arith.constant 0.000000e+00 : f32
    %8 = vector.broadcast %cst_6 : f32 to vector<32x256xf32>
    %9 = arith.maximumf %7, %8 : vector<32x256xf32>
    %c0_7 = arith.constant 0 : index
    %c0_8 = arith.constant 0 : index
    %c0_9 = arith.constant 0 : index
    %10 = vector.load %arg5[%c0_7, %c0_8, %c0_9] : memref<1x32x256xf32, #tpu.memory_space<vmem>>, vector<1x32x256xf32>
    %11 = vector.shape_cast %10 : vector<1x32x256xf32> to vector<32x256xf32>
    %12 = vector.shape_cast %9 : vector<32x256xf32> to vector<1x32x256xf32>
    tpu.vector_store %arg5[%c0_7, %c0_8, %c0_9], %12 {strides = array<i32>} : memref<1x32x256xf32, #tpu.memory_space<vmem>>, vector<1x32x256xf32>,
    return
  }
  func.func @transform_0(%arg0: i32, %arg1: i32) -> (i32, i32, i32) {
    %c0_i32 = arith.constant 0 : i32
    %c0_i32_0 = arith.constant 0 : i32
    return %arg0, %c0_i32, %arg1 : i32, i32, i32
  }
  func.func @transform_1(%arg0: i32, %arg1: i32) -> (i32, i32) {
    %c0_i32 = arith.constant 0 : i32
    %c0_i32_0 = arith.constant 0 : i32
    %c0_i32_1 = arith.constant 0 : i32
    return %c0_i32, %c0_i32_0 : i32, i32
  }
  func.func @transform_2(%arg0: i32, %arg1: i32) -> (i32, i32) {
    %c0_i32 = arith.constant 0 : i32
    %c0_i32_0 = arith.constant 0 : i32
    %c0_i32_1 = arith.constant 0 : i32
    return %c0_i32, %c0_i32_0 : i32, i32
  }
  func.func @transform_3(%arg0: i32, %arg1: i32) -> (i32, i32, i32) {
    %c0_i32 = arith.constant 0 : i32
    %c0_i32_0 = arith.constant 0 : i32
    return %arg0, %c0_i32, %arg1 : i32, i32, i32
  }
}

</mosaic_0001>

<bundles_post_ra>
// kernel: tpu_custom_call.1
= control target key start
LH: loop header
LB: loop body
LE: loop exit
PB: predicated region body
PF: predicated region fallthrough
CT: control target
= control target key end

     0   :  { %8 = vsyncpa [#allocation3], 0  ;;  %s1689_s0 = inlined_call_operand.hbm [shape: f32[2,768,256], index: 0, kind: input, shape index: {}]   ;;  %s1690_s1 = inlined_call_operand.hbm [shape: bf16[32,768], index: 1, kind: input, shape index: {}]   ;;  %s1691_s2 = inlined_call_operand.vmem [shape: f32[32,1], index: 2, kind: input, shape index: {}]   ;;  %s1692_s3 = inlined_call_operand.hbm [shape: f32[2,32,256], index: 3, kind: output, shape index: {}]  }
   0x1   :  { %10 = vsyncpa [#allocation3 + $0x1], 0 }
   0x2   :  { %11 = vsyncpa [#allocation6], 0 }
   0x3   :  { %12 = vsyncpa [#allocation4], 0 }
   0x4   :  { %14 = vsyncpa [#allocation4 + $0x1], 0  ;;  %s1258_s12 = smov 0   ;;  %s1260_s13 = smov 0  }
   0x5   :  { %s1262_s14 = smov 0   ;;  %s1264_s15 = smov 0  }
   0x6   :  { %s1266_s16 = smov 0   ;;  %s1268_s17 = smov 0  }
   0x7 LB: > { %s896_s18 = sadd.s32 4294967295, %s1226_s17   ;;  %s897_s19 = sadd.s32 4294967294, %s1226_s17   ;;  %s1226_s17 = sphi %s1268_s17, %s20_s17   ;;  %s1222_s16 = sphi %s1266_s16, %s1715_s16   ;;  %s1218_s15 = sphi %s1264_s15, %s1714_s15   ;;  %s1214_s14 = sphi %s1262_s14, %s1713_s14   ;;  %s1210_s13 = sphi %s1260_s13, %s1712_s13   ;;  %s1206_s12 = sphi %s1258_s12, %s1711_s12  }
   0x8   : > { %p54_p0 = scmp.ne.s32.totalorder %s1210_s13, %s1206_s12  ;;  %p1292_p1 = scmp.eq.s32.totalorder %s896_s18, 0 }
   0x9   : > { %p1296_p2 = scmp.eq.s32.totalorder %s896_s18, 1  ;;  %p128_p3 = scmp.eq.s32.totalorder %s897_s19, 1 }
   0xa   : > { %s1697_s20 = scalar_select %p1292_p1, 1, 0 }
   0xb   : > { %s1698_s21 = scalar_select %p1296_p2, 1, 0 }
   0xc   : > { %p1302_p4 = por %p1292_p1, %p54_p0  ;;  %p898_p5 = scmp.ge.s32.totalorder %s1226_s17, 1 }
   0xd   : > { %p1307_p6 = por %p128_p3, %p54_p0  ;;  %p135_p7 = scmp.lt.s32.totalorder %s1226_s17, 3 }
   0xe   : > { %s1699_s22 = scalar_select %p1302_p4, 1, 0 }
   0xf   : > { %s1700_s23 = scalar_select %p1307_p6, 1, 0 }
  0x10   : > { %p1312_p8 = pnand %p898_p5, %p135_p7  ;;  %s1228_s25 = smov [#allocation5]  }
  0x11   : > { %s147_s26 = sshll.u32 %s1228_s25, 4  ;;  %s32_s28 = sadd.s32 1, %s1222_s16  ;;  %s148_s26 = int_to_ptr.vmem [resolvable:$true] %s147_s26 }
  0x12   : > { %s1701_s24 = scalar_select %p1312_p8, 1, 0 }
  0x13   : > { %p990_p9 = pneg %p1312_p8  ;;  %s1082_s4 = scalar_lea.hbm %s1690_s1, 1536 }
  0x14   : > { %p1083_p12 = scmp.ne.s32.totalorder %s1690_s1, %s1082_s4  ;;  %p1089_p5 = scmp.lt.u32.totalorder %s1082_s4, %s1690_s1 }
  0x15   : > { %p1321_p11 = pnand %p990_p9, %p1292_p1 }
  0x17   : > { %p1084_p13 = pneg %p1321_p11 }
  0x19   : > { %p1085_p0 = pnand %p1084_p13, %p1083_p12 }
  0x1b   : > { %p1086_p3 = pneg %p1085_p0 }
  0x1d   : > { %p1091_p7 = pnand %p1089_p5, %p1086_p3 }
  0x1f   : > { %1094 = shalt.err (!%p1091_p7)
}
  0x20   : > { %s1095_s9 = scalar_lea.vmem %s148_s26, 1536  ;;  %p1103_p1 = scmp.lt.s32.totalorder %s148_s26, %s148_s26 }
  0x21   : > { %p1096_p9 = scmp.ne.s32.totalorder %s148_s26, %s1095_s9  ;;  %p1104_p4 = scmp.lt.s32.totalorder %s1095_s9, %s1095_s9 }
  0x23   : > { %p1098_p10 = pnand %p1096_p9, %p1084_p13  ;;  %p1105_p8 = por %p1104_p4, %p1103_p1 }
  0x25   : > { %p1099_p6 = pneg %p1098_p10 }
  0x27   : > { %p1106_p2 = pnand %p1105_p8, %p1099_p6 }
  0x29   : > { %1109 = shalt.err (!%p1106_p2)
}
  0x2a   : > { %s1229_s10 = smov 384   ;;  %s1230_s11 = smov 24  }
  0x2b   : > { %993 = dma.hbm_to_vmem [thread:$0]  (!%p1321_p11), %s1690_s1, 1536, %s148_s26, [#allocation6], %s1229_s10, %s1229_s10, %s1230_s11  }
  0x2c   : > { %p34_p1 = scmp.ge.s32.totalorder %s32_s28, 2  ;;  %s41_s25 = sadd.s32 1, %s1214_s14 }
  0x2d   : > { %p48_p2 = scmp.ne.s32.totalorder %s1214_s14, %s1210_s13  ;;  %p49_p4 = scmp.eq.s32.totalorder %s1226_s17, 0 }
  0x2e   : > { %s1717_s28 = smov (%p34_p1, %s32_s28), 0  ;;  %p1703_p8 = scmp.ne.s32.totalorder %s1698_s21, 0 }
  0x2f   : > { %p50_p6 = por %p49_p4, %p48_p2  ;;  %s36_s30 = ssub.s32 %s1222_s16, %s1717_s28 }
  0x30   : > { %p1350_p10 = por %p1703_p8, %p48_p2  ;;  %p1003_p12 = scmp.lt.s32.totalorder %s1226_s17, 2 }
  0x31   : > { %p39_p13 = scmp.eq.s32.totalorder %s36_s30, 0  ;;  %s164_s27 = sand.u32 1, %s1214_s14  }
  0x32   : > { %s979_s4 = smul.u32 1536, %s164_s27  ;;  %p1362_p11 = pnand %p1003_p12, %p50_p6 }
  0x33   : > { %s1359_s5 = scalar_select %p39_p13, %s1214_s14, %s41_s25  }
  0x34   : > { %s980_s26 = smul.u32 24576, %s1222_s16  ;;  %s168_s6 = scalar_lea.vmem [#allocation2], %s979_s4 }
  0x35   : > { %s177_s7 = sshll.u32 %s168_s6, 4  ;;  %s1373_s11 = scalar_lea.sflag [#allocation3], %s164_s27  ;;  %s1371_s7 = int_to_ptr.vmem [resolvable:$true] %s177_s7 }
  0x36   : > { %s1369_s10 = scalar_lea.hbm %s1689_s0, %s980_s26  ;;  %p1112_p3 = pneg %p1362_p11 }
  0x37   : > { %s1110_s18 = scalar_lea.hbm %s1369_s10, 24576  ;;  %s1115_s30 = scalar_lea.hbm %s1689_s0, 49152 }
  0x38   : > { %p1111_p0 = scmp.ne.s32.totalorder %s1369_s10, %s1110_s18  ;;  %p1116_p9 = scmp.lt.u32.totalorder %s1369_s10, %s1689_s0 }
  0x39   : > { %p1117_p1 = scmp.lt.u32.totalorder %s1115_s30, %s1110_s18  ;;  %p1119_p4 = scmp.lt.u32.totalorder %s1110_s18, %s1369_s10 }
  0x3a   : > { %p1113_p5 = pnand %p1112_p3, %p1111_p0 }
  0x3b   : > { %p1118_p2 = por %p1117_p1, %p1116_p9 }
  0x3c   : > { %p1114_p7 = pneg %p1113_p5 }
  0x3d   : > { %p1120_p6 = por %p1119_p4, %p1118_p2 }
  0x3f   : > { %p1121_p8 = pnand %p1120_p6, %p1114_p7 }
  0x41   : > { %1124 = shalt.err (!%p1121_p8)
}
  0x42   : > { %s1125_s27 = scalar_lea.vmem %s1371_s7, 24576  ;;  %s1231_s6 = smov [#allocation2]  }
  0x43   : > { %p1126_p12 = scmp.ne.s32.totalorder %s1371_s7, %s1125_s27  ;;  %s1130_s9 = sshll.u32 %s1231_s6, 4  ;;  %s1131_s9 = int_to_ptr.vmem [resolvable:$false] %s1130_s9 }
  0x44   : > { %s1132_s21 = scalar_lea.vmem %s1131_s9, 49152  ;;  %p1133_p5 = scmp.lt.s32.totalorder %s1371_s7, %s1131_s9 }
  0x45   : > { %p1128_p13 = pnand %p1126_p12, %p1112_p3  ;;  %p1134_p9 = scmp.lt.s32.totalorder %s1132_s21, %s1125_s27 }
  0x47   : > { %p1129_p0 = pneg %p1128_p13  ;;  %p1135_p1 = por %p1134_p9, %p1133_p5 }
  0x49   : > { %p1136_p2 = pnand %p1135_p1, %p1129_p0 }
  0x4b   : > { %1139 = shalt.err (!%p1136_p2)
}
  0x4c   : > { %s1232_s18 = smov 256   ;;  %s1233_s19 = smov 16  }
  0x4d   : > { %997 = dma.hbm_to_vmem [thread:$0]  (!%p1362_p11), %s1369_s10, 24576, %s1371_s7, %s1373_s11, %s1232_s18, %s1232_s18, %s1233_s19  }
  0x4e   : > { %p1706_p3 = scmp.ne.s32.totalorder %s1701_s24, 0 }
  0x4f   : > { %s1404_s25 = sand.u32 (!%p1706_p3), 1, %s1210_s13   ;;  %p1707_p7 = scmp.ne.s32.totalorder (!%p1706_p3), %s1699_s22, 0 }
  0x50   : > { %189 = sbr.rel (%p1706_p3) target bundleno = 458 (0x1ca), region = 32  ;;  %s192_s4 = scalar_lea.sflag (!%p1706_p3), [#allocation3], %s1404_s25 }
  0x51   : > { %s981_s30 = smul.u32 (!%p1706_p3), 1536, %s1404_s25 }
  0x53   : > { %s1408_s26 = scalar_lea.vmem (!%p1706_p3), [#allocation2], %s981_s30 }
  0x57   : > { %1193 = dma.done.wait (%p1707_p7), %s192_s4, 24576  }
  0x58   : > { %1195 = vsyncadd (%p1707_p7), %s192_s4, 4294942720  ;;  %p1708_p11 = scmp.ne.s32.totalorder %s1697_s20, 0 }
  0x5a   : > { %1197 = dma.done.wait (%p1708_p11), [#allocation6], 1536  }
  0x5b   : > { %1199 = vsyncadd (%p1708_p11), [#allocation6], 4294965760  ;;  %v241_v0 = vld [vmem:[%s1408_s26 + $0x8] sm:$0xff]  ;;  %v243_v1 = vld [vmem:[%s1408_s26 + $0x18] sm:$0xff]  ;;  %v1234_v25 = vmov 0   ;;  %s904_s6 = sshll.u32 %s1404_s25, 6 }
  0x5c   : > { %v305_v2 = vld [vmem:[%s1408_s26 + $0x208] sm:$0xff]  ;;  %v433_v3 = vpack.c.bf16 %v243_v1, %v241_v0  ;;  %v307_v4 = vld [vmem:[%s1408_s26 + $0x218] sm:$0xff]  ;;  %v240_v5 = vld [vmem:[%s1408_s26] sm:$0xff]  ;;  %1063 = vset.pattern.permute.xlu1 %v1234_v25  ;;  %1062 = vset.pattern.permute.xlu0 %v1234_v25  ;;  %s1623_s9 = scalar_lea.vmem [#allocation7], %s904_s6  ;;  %s922_s18 = sshll.u32 %s1218_s15, 10 }
  0x5d   : > { %v242_v6 = vld [vmem:[%s1408_s26 + $0x10] sm:$0xff]  ;;  %v465_v7 = vpack.c.bf16 %v307_v4, %v305_v2  ;;  %v304_v9 = vld [vmem:[%s1408_s26 + $0x200] sm:$0xff]  ;;  %v245_v11 = vld [vmem:[%s1408_s26 + $0x28] sm:$0xff]  ;;  %s799_s21 = sshll.u32 %s1623_s9, 4  ;;  %s1635_s30 = scalar_lea.hbm %s1692_s3, %s922_s18  ;;  %s1627_s21 = int_to_ptr.vmem [resolvable:$true] %s799_s21 }
  0x5e   : > { %v432_v8 = vpack.c.bf16 %v242_v6, %v240_v5  ;;  %v306_v10 = vld [vmem:[%s1408_s26 + $0x210] sm:$0xff]  ;;  %608 = vmatprep.subr.bf16.mxu1 %v433_v3  ;;  %v247_v13 = vld [vmem:[%s1408_s26 + $0x38] sm:$0xff]  ;;  %v309_v14 = vld [vmem:[%s1408_s26 + $0x228] sm:$0xff]  ;;  %s784_s4 = scalar_lea.sflag [#allocation4], %s1404_s25  ;;  %s1235_s20 = smov [#allocation7]  }
  0x5f   : > { %v464_v12 = vpack.c.bf16 %v306_v10, %v304_v9  ;;  %v311_v15 = vld [vmem:[%s1408_s26 + $0x238] sm:$0xff]  ;;  %661 = vmatprep.subr.bf16.mxu0 %v465_v7  ;;  %v435_v16 = vpack.c.bf16 %v247_v13, %v245_v11  ;;  %v244_v18 = vld [vmem:[%s1408_s26 + $0x20] sm:$0xff]  ;;  %v246_v19 = vld [vmem:[%s1408_s26 + $0x30] sm:$0xff]  ;;  %s1144_s22 = sshll.u32 %s1235_s20, 4  ;;  %s1145_s22 = int_to_ptr.vmem [resolvable:$false] %s1144_s22 }
  0x60   : > { %609 = vmatpush1.bf16.msra.mxu1 %v432_v8  ;;  %v467_v17 = vpack.c.bf16 %v311_v15, %v309_v14  ;;  %v308_v20 = vld [vmem:[%s1408_s26 + $0x220] sm:$0xff]  ;;  %v434_v21 = vpack.c.bf16 %v246_v19, %v244_v18  ;;  %v310_v22 = vld [vmem:[%s1408_s26 + $0x230] sm:$0xff]  ;;  %v249_v23 = vld [vmem:[%s1408_s26 + $0x48] sm:$0xff]  ;;  %s1146_s24 = scalar_lea.vmem %s1145_s22, 2048  ;;  %p1147_p12 = scmp.lt.s32.totalorder %s1627_s21, %s1145_s22 }
  0x61   : > { %662 = vmatpush1.bf16.msra.mxu0 %v464_v12  ;;  %v251_v24 = vld [vmem:[%s1408_s26 + $0x58] sm:$0xff]  ;;  %610 = vmatprep.subr.bf16.mxu1 %v435_v16  ;;  %v466_v26 = vpack.c.bf16 %v310_v22, %v308_v20  ;;  %v313_v28 = vld [vmem:[%s1408_s26 + $0x248] sm:$0xff]  ;;  %v248_v30 = vld [vmem:[%s1408_s26 + $0x40] sm:$0xff] }
  0x62   : > { %663 = vmatprep.subr.bf16.mxu0 %v467_v17  ;;  %v437_v27 = vpack.c.bf16 %v251_v24, %v249_v23  ;;  %v315_v29 = vld [vmem:[%s1408_s26 + $0x258] sm:$0xff]  ;;  %v250_v32 = vld [vmem:[%s1408_s26 + $0x50] sm:$0xff]  ;;  %v312_v33 = vld [vmem:[%s1408_s26 + $0x240] sm:$0xff] }
  0x63   : > { %v469_v31 = vpack.c.bf16 %v315_v29, %v313_v28  ;;  %v314_v34 = vld [vmem:[%s1408_s26 + $0x250] sm:$0xff]  ;;  %v436_v35 = vpack.c.bf16 %v250_v32, %v248_v30  ;;  %v253_v36 = vld [vmem:[%s1408_s26 + $0x68] sm:$0xff]  ;;  %v255_v37 = vld [vmem:[%s1408_s26 + $0x78] sm:$0xff] }
  0x64   : > { %611 = vmatpush1.bf16.msra.mxu1 %v434_v21  ;;  %v317_v38 = vld [vmem:[%s1408_s26 + $0x268] sm:$0xff]  ;;  %v468_v39 = vpack.c.bf16 %v314_v34, %v312_v33  ;;  %v439_v40 = vpack.c.bf16 %v255_v37, %v253_v36  ;;  %v319_v41 = vld [vmem:[%s1408_s26 + $0x278] sm:$0xff]  ;;  %v252_v42 = vld [vmem:[%s1408_s26 + $0x60] sm:$0xff] }
  0x65   : > { %664 = vmatpush1.bf16.msra.mxu0 %v466_v26  ;;  %612 = vmatprep.subr.bf16.mxu1 %v437_v27  ;;  %v254_v43 = vld [vmem:[%s1408_s26 + $0x70] sm:$0xff]  ;;  %v471_v44 = vpack.c.bf16 %v319_v41, %v317_v38  ;;  %v316_v45 = vld [vmem:[%s1408_s26 + $0x260] sm:$0xff]  ;;  %v257_v47 = vld [vmem:[%s1408_s26 + $0x88] sm:$0xff] }
  0x66   : > { %665 = vmatprep.subr.bf16.mxu0 %v469_v31  ;;  %v318_v46 = vld [vmem:[%s1408_s26 + $0x270] sm:$0xff]  ;;  %v259_v48 = vld [vmem:[%s1408_s26 + $0x98] sm:$0xff]  ;;  %v321_v49 = vld [vmem:[%s1408_s26 + $0x288] sm:$0xff]  ;;  %v438_v51 = vpack.c.bf16 %v254_v43, %v252_v42 }
  0x67   : > { %v323_v50 = vld [vmem:[%s1408_s26 + $0x298] sm:$0xff]  ;;  %v470_v52 = vpack.c.bf16 %v318_v46, %v316_v45  ;;  %v441_v53 = vpack.c.bf16 %v259_v48, %v257_v47  ;;  %v256_v54 = vld [vmem:[%s1408_s26 + $0x80] sm:$0xff]  ;;  %v258_v55 = vld [vmem:[%s1408_s26 + $0x90] sm:$0xff] }
  0x68   : > { %613 = vmatpush1.bf16.msra.mxu1 %v436_v35  ;;  %v320_v56 = vld [vmem:[%s1408_s26 + $0x280] sm:$0xff]  ;;  %v473_v57 = vpack.c.bf16 %v323_v50, %v321_v49  ;;  %v322_v58 = vld [vmem:[%s1408_s26 + $0x290] sm:$0xff]  ;;  %v261_v59 = vld [vmem:[%s1408_s26 + $0xa8] sm:$0xff]  ;;  %v440_v63 = vpack.c.bf16 %v258_v55, %v256_v54 }
  0x69   : > { %666 = vmatpush1.bf16.msra.mxu0 %v468_v39  ;;  %614 = vmatprep.subr.bf16.mxu1 %v439_v40  ;;  %v263_v60 = vld [vmem:[%s1408_s26 + $0xb8] sm:$0xff]  ;;  %v325_v61 = vld [vmem:[%s1408_s26 + $0x2a8] sm:$0xff]  ;;  %v472_v0 = vpack.c.bf16 %v322_v58, %v320_v56  ;;  %v260_v2 = vld [vmem:[%s1408_s26 + $0xa0] sm:$0xff] }
  0x6a   : > { %667 = vmatprep.subr.bf16.mxu0 %v471_v44  ;;  %v327_v62 = vld [vmem:[%s1408_s26 + $0x2b8] sm:$0xff]  ;;  %v443_v1 = vpack.c.bf16 %v263_v60, %v261_v59  ;;  %v262_v3 = vld [vmem:[%s1408_s26 + $0xb0] sm:$0xff]  ;;  %v324_v4 = vld [vmem:[%s1408_s26 + $0x2a0] sm:$0xff] }
  0x6b   : > { %v475_v5 = vpack.c.bf16 %v327_v62, %v325_v61  ;;  %v326_v6 = vld [vmem:[%s1408_s26 + $0x2b0] sm:$0xff]  ;;  %v265_v7 = vld [vmem:[%s1408_s26 + $0xc8] sm:$0xff]  ;;  %v267_v8 = vld [vmem:[%s1408_s26 + $0xd8] sm:$0xff]  ;;  %v442_v11 = vpack.c.bf16 %v262_v3, %v260_v2 }
  0x6c   : > { %615 = vmatpush1.bf16.msra.mxu1 %v438_v51  ;;  %v329_v9 = vld [vmem:[%s1408_s26 + $0x2c8] sm:$0xff]  ;;  %v331_v10 = vld [vmem:[%s1408_s26 + $0x2d8] sm:$0xff]  ;;  %v474_v12 = vpack.c.bf16 %v326_v6, %v324_v4  ;;  %v445_v13 = vpack.c.bf16 %v267_v8, %v265_v7  ;;  %v264_v14 = vld [vmem:[%s1408_s26 + $0xc0] sm:$0xff] }
  0x6d   : > { %668 = vmatpush1.bf16.msra.mxu0 %v470_v52  ;;  %616 = vmatprep.subr.bf16.mxu1 %v441_v53  ;;  %v266_v15 = vld [vmem:[%s1408_s26 + $0xd0] sm:$0xff]  ;;  %v328_v16 = vld [vmem:[%s1408_s26 + $0x2c0] sm:$0xff]  ;;  %v477_v17 = vpack.c.bf16 %v331_v10, %v329_v9  ;;  %v269_v19 = vld [vmem:[%s1408_s26 + $0xe8] sm:$0xff] }
  0x6e   : > { %669 = vmatprep.subr.bf16.mxu0 %v473_v57  ;;  %v330_v18 = vld [vmem:[%s1408_s26 + $0x2d0] sm:$0xff]  ;;  %v271_v20 = vld [vmem:[%s1408_s26 + $0xf8] sm:$0xff]  ;;  %v333_v21 = vld [vmem:[%s1408_s26 + $0x2e8] sm:$0xff]  ;;  %v444_v23 = vpack.c.bf16 %v266_v15, %v264_v14 }
  0x6f   : > { %v335_v22 = vld [vmem:[%s1408_s26 + $0x2f8] sm:$0xff]  ;;  %v476_v24 = vpack.c.bf16 %v330_v18, %v328_v16  ;;  %v447_v25 = vpack.c.bf16 %v271_v20, %v269_v19  ;;  %v268_v26 = vld [vmem:[%s1408_s26 + $0xe0] sm:$0xff]  ;;  %v270_v27 = vld [vmem:[%s1408_s26 + $0xf0] sm:$0xff] }
  0x70   : > { %617 = vmatpush1.bf16.msra.mxu1 %v440_v63  ;;  %v332_v28 = vld [vmem:[%s1408_s26 + $0x2e0] sm:$0xff]  ;;  %v479_v29 = vpack.c.bf16 %v335_v22, %v333_v21  ;;  %v334_v30 = vld [vmem:[%s1408_s26 + $0x2f0] sm:$0xff]  ;;  %v273_v31 = vld [vmem:[%s1408_s26 + $0x108] sm:$0xff]  ;;  %v446_v35 = vpack.c.bf16 %v270_v27, %v268_v26 }
  0x71   : > { %670 = vmatpush1.bf16.msra.mxu0 %v472_v0  ;;  %618 = vmatprep.subr.bf16.mxu1 %v443_v1  ;;  %v275_v32 = vld [vmem:[%s1408_s26 + $0x118] sm:$0xff]  ;;  %v337_v33 = vld [vmem:[%s1408_s26 + $0x308] sm:$0xff]  ;;  %v478_v36 = vpack.c.bf16 %v334_v30, %v332_v28  ;;  %v272_v38 = vld [vmem:[%s1408_s26 + $0x100] sm:$0xff] }
  0x72   : > { %671 = vmatprep.subr.bf16.mxu0 %v475_v5  ;;  %v339_v34 = vld [vmem:[%s1408_s26 + $0x318] sm:$0xff]  ;;  %v449_v37 = vpack.c.bf16 %v275_v32, %v273_v31  ;;  %v274_v39 = vld [vmem:[%s1408_s26 + $0x110] sm:$0xff]  ;;  %v336_v40 = vld [vmem:[%s1408_s26 + $0x300] sm:$0xff] }
  0x73   : > { %v481_v41 = vpack.c.bf16 %v339_v34, %v337_v33  ;;  %v338_v42 = vld [vmem:[%s1408_s26 + $0x310] sm:$0xff]  ;;  %v277_v43 = vld [vmem:[%s1408_s26 + $0x128] sm:$0xff]  ;;  %v279_v44 = vld [vmem:[%s1408_s26 + $0x138] sm:$0xff]  ;;  %v448_v47 = vpack.c.bf16 %v274_v39, %v272_v38 }
  0x74   : > { %619 = vmatpush1.bf16.msra.mxu1 %v442_v11  ;;  %v341_v45 = vld [vmem:[%s1408_s26 + $0x328] sm:$0xff]  ;;  %v343_v46 = vld [vmem:[%s1408_s26 + $0x338] sm:$0xff]  ;;  %v480_v48 = vpack.c.bf16 %v338_v42, %v336_v40  ;;  %v451_v49 = vpack.c.bf16 %v279_v44, %v277_v43  ;;  %v276_v50 = vld [vmem:[%s1408_s26 + $0x120] sm:$0xff] }
  0x75   : > { %672 = vmatpush1.bf16.msra.mxu0 %v474_v12  ;;  %620 = vmatprep.subr.bf16.mxu1 %v445_v13  ;;  %v278_v51 = vld [vmem:[%s1408_s26 + $0x130] sm:$0xff]  ;;  %v340_v52 = vld [vmem:[%s1408_s26 + $0x320] sm:$0xff]  ;;  %v483_v53 = vpack.c.bf16 %v343_v46, %v341_v45  ;;  %v281_v55 = vld [vmem:[%s1408_s26 + $0x148] sm:$0xff] }
  0x76   : > { %673 = vmatprep.subr.bf16.mxu0 %v477_v17  ;;  %v342_v54 = vld [vmem:[%s1408_s26 + $0x330] sm:$0xff]  ;;  %v283_v56 = vld [vmem:[%s1408_s26 + $0x158] sm:$0xff]  ;;  %v345_v57 = vld [vmem:[%s1408_s26 + $0x348] sm:$0xff]  ;;  %v450_v59 = vpack.c.bf16 %v278_v51, %v276_v50 }
  0x77   : > { %v347_v58 = vld [vmem:[%s1408_s26 + $0x358] sm:$0xff]  ;;  %v482_v60 = vpack.c.bf16 %v342_v54, %v340_v52  ;;  %v453_v61 = vpack.c.bf16 %v283_v56, %v281_v55  ;;  %v280_v62 = vld [vmem:[%s1408_s26 + $0x140] sm:$0xff]  ;;  %v282_v63 = vld [vmem:[%s1408_s26 + $0x150] sm:$0xff] }
  0x78   : > { %621 = vmatpush1.bf16.msra.mxu1 %v444_v23  ;;  %v344_v0 = vld [vmem:[%s1408_s26 + $0x340] sm:$0xff]  ;;  %v485_v1 = vpack.c.bf16 %v347_v58, %v345_v57  ;;  %v346_v2 = vld [vmem:[%s1408_s26 + $0x350] sm:$0xff]  ;;  %v285_v3 = vld [vmem:[%s1408_s26 + $0x168] sm:$0xff]  ;;  %v452_v7 = vpack.c.bf16 %v282_v63, %v280_v62 }
  0x79   : > { %674 = vmatpush1.bf16.msra.mxu0 %v476_v24  ;;  %622 = vmatprep.subr.bf16.mxu1 %v447_v25  ;;  %v287_v4 = vld [vmem:[%s1408_s26 + $0x178] sm:$0xff]  ;;  %v349_v5 = vld [vmem:[%s1408_s26 + $0x368] sm:$0xff]  ;;  %v284_v8 = vld [vmem:[%s1408_s26 + $0x160] sm:$0xff]  ;;  %v484_v10 = vpack.c.bf16 %v346_v2, %v344_v0 }
  0x7a   : > { %675 = vmatprep.subr.bf16.mxu0 %v479_v29  ;;  %v351_v6 = vld [vmem:[%s1408_s26 + $0x378] sm:$0xff]  ;;  %v286_v9 = vld [vmem:[%s1408_s26 + $0x170] sm:$0xff]  ;;  %v455_v11 = vpack.c.bf16 %v287_v4, %v285_v3  ;;  %v348_v12 = vld [vmem:[%s1408_s26 + $0x360] sm:$0xff] }
  0x7b   : > { %v350_v13 = vld [vmem:[%s1408_s26 + $0x370] sm:$0xff]  ;;  %v289_v14 = vld [vmem:[%s1408_s26 + $0x188] sm:$0xff]  ;;  %v487_v15 = vpack.c.bf16 %v351_v6, %v349_v5  ;;  %v291_v16 = vld [vmem:[%s1408_s26 + $0x198] sm:$0xff]  ;;  %v454_v20 = vpack.c.bf16 %v286_v9, %v284_v8 }
  0x7c   : > { %623 = vmatpush1.bf16.msra.mxu1 %v446_v35  ;;  %v353_v17 = vld [vmem:[%s1408_s26 + $0x388] sm:$0xff]  ;;  %v355_v18 = vld [vmem:[%s1408_s26 + $0x398] sm:$0xff]  ;;  %v288_v21 = vld [vmem:[%s1408_s26 + $0x180] sm:$0xff]  ;;  %v486_v22 = vpack.c.bf16 %v350_v13, %v348_v12  ;;  %v457_v23 = vpack.c.bf16 %v291_v16, %v289_v14 }
  0x7d   : > { %676 = vmatpush1.bf16.msra.mxu0 %v478_v36  ;;  %624 = vmatprep.subr.bf16.mxu1 %v449_v37  ;;  %v1066_v19 = vld [vmem:[#allocation5 + $0x4] ss:$24 sps:$4 sm:$0xff]   ;;  %v290_v24 = vld [vmem:[%s1408_s26 + $0x190] sm:$0xff]  ;;  %v489_v27 = vpack.c.bf16 %v355_v18, %v353_v17  ;;  %v293_v29 = vld [vmem:[%s1408_s26 + $0x1a8] sm:$0xff] }
  0x7e   : > { %677 = vmatprep.subr.bf16.mxu0 %v481_v41  ;;  %v352_v25 = vld [vmem:[%s1408_s26 + $0x380] sm:$0xff]  ;;  %v354_v28 = vld [vmem:[%s1408_s26 + $0x390] sm:$0xff]  ;;  %v295_v30 = vld [vmem:[%s1408_s26 + $0x1b8] sm:$0xff]  ;;  %640 = vmatprep.mubr.bf16.mxu1 %v1066_v19  ;;  %v456_v33 = vpack.c.bf16 %v290_v24, %v288_v21 }
  0x7f   : > { %v1069_v26 = vld [vmem:[#allocation5 + $0xc] ss:$24 sps:$4 sm:$0xff]   ;;  %v359_v32 = vld [vmem:[%s1408_s26 + $0x3b8] sm:$0xff]  ;;  %v488_v34 = vpack.c.bf16 %v354_v28, %v352_v25  ;;  %v459_v35 = vpack.c.bf16 %v295_v30, %v293_v29  ;;  %v294_v37 = vld [vmem:[%s1408_s26 + $0x1b0] sm:$0xff] }
  0x80   : > { %625 = vmatpush1.bf16.msra.mxu1 %v448_v47  ;;  %v357_v31 = vld [vmem:[%s1408_s26 + $0x3a8] sm:$0xff]  ;;  %693 = vmatprep.mubr.bf16.mxu0 %v1069_v26  ;;  %v292_v36 = vld [vmem:[%s1408_s26 + $0x1a0] sm:$0xff]  ;;  %v358_v40 = vld [vmem:[%s1408_s26 + $0x3b0] sm:$0xff] }
  0x81   : > { %678 = vmatpush1.bf16.msra.mxu0 %v480_v48  ;;  %626 = vmatprep.subr.bf16.mxu1 %v451_v49  ;;  %v356_v38 = vld [vmem:[%s1408_s26 + $0x3a0] sm:$0xff]  ;;  %v491_v39 = vpack.c.bf16 %v359_v32, %v357_v31  ;;  %v297_v41 = vld [vmem:[%s1408_s26 + $0x1c8] sm:$0xff]  ;;  %v299_v42 = vld [vmem:[%s1408_s26 + $0x1d8] sm:$0xff]  ;;  %v458_v45 = vpack.c.bf16 %v294_v37, %v292_v36 }
  0x82   : > { %679 = vmatprep.subr.bf16.mxu0 %v483_v53  ;;  %v361_v43 = vld [vmem:[%s1408_s26 + $0x3c8] sm:$0xff]  ;;  %v363_v44 = vld [vmem:[%s1408_s26 + $0x3d8] sm:$0xff]  ;;  %v490_v46 = vpack.c.bf16 %v358_v40, %v356_v38  ;;  %v461_v47 = vpack.c.bf16 %v299_v42, %v297_v41  ;;  %v296_v48 = vld [vmem:[%s1408_s26 + $0x1c0] sm:$0xff] }
  0x83   : > { %v298_v49 = vld [vmem:[%s1408_s26 + $0x1d0] sm:$0xff]  ;;  %v360_v50 = vld [vmem:[%s1408_s26 + $0x3c0] sm:$0xff]  ;;  %v493_v51 = vpack.c.bf16 %v363_v44, %v361_v43  ;;  %v301_v53 = vld [vmem:[%s1408_s26 + $0x1e8] sm:$0xff] }
  0x84   : > { %627 = vmatpush1.bf16.msra.mxu1 %v450_v59  ;;  %v362_v52 = vld [vmem:[%s1408_s26 + $0x3d0] sm:$0xff]  ;;  %v303_v54 = vld [vmem:[%s1408_s26 + $0x1f8] sm:$0xff]  ;;  %v365_v55 = vld [vmem:[%s1408_s26 + $0x3e8] sm:$0xff]  ;;  %v460_v57 = vpack.c.bf16 %v298_v49, %v296_v48 }
  0x85   : > { %680 = vmatpush1.bf16.msra.mxu0 %v482_v60  ;;  %628 = vmatprep.subr.bf16.mxu1 %v453_v61  ;;  %v367_v56 = vld [vmem:[%s1408_s26 + $0x3f8] sm:$0xff]  ;;  %v492_v58 = vpack.c.bf16 %v362_v52, %v360_v50  ;;  %v463_v59 = vpack.c.bf16 %v303_v54, %v301_v53  ;;  %v300_v60 = vld [vmem:[%s1408_s26 + $0x1e0] sm:$0xff]  ;;  %v302_v61 = vld [vmem:[%s1408_s26 + $0x1f0] sm:$0xff] }
  0x86   : > { %681 = vmatprep.subr.bf16.mxu0 %v485_v1  ;;  %v364_v62 = vld [vmem:[%s1408_s26 + $0x3e0] sm:$0xff]  ;;  %v495_v63 = vpack.c.bf16 %v367_v56, %v365_v55  ;;  %v366_v0 = vld [vmem:[%s1408_s26 + $0x3f0] sm:$0xff]  ;;  %v369_v1 = vld [vmem:[%s1408_s26 + $0x408] sm:$0xff]  ;;  %v462_v3 = vpack.c.bf16 %v302_v61, %v300_v60 }
  0x87   : > { %v371_v2 = vld [vmem:[%s1408_s26 + $0x418] sm:$0xff]  ;;  %v494_v4 = vpack.c.bf16 %v366_v0, %v364_v62  ;;  %v368_v6 = vld [vmem:[%s1408_s26 + $0x400] sm:$0xff]  ;;  %v373_v8 = vld [vmem:[%s1408_s26 + $0x428] sm:$0xff] }
  0x88   : > { %629 = vmatpush1.bf16.msra.mxu1 %v452_v7  ;;  %v497_v5 = vpack.c.bf16 %v371_v2, %v369_v1  ;;  %v370_v7 = vld [vmem:[%s1408_s26 + $0x410] sm:$0xff]  ;;  %v375_v9 = vld [vmem:[%s1408_s26 + $0x438] sm:$0xff]  ;;  %v372_v14 = vld [vmem:[%s1408_s26 + $0x420] sm:$0xff] }
  0x89   : > { %682 = vmatpush1.bf16.msra.mxu0 %v484_v10  ;;  %630 = vmatprep.subr.bf16.mxu1 %v455_v11  ;;  %v1064_v10 = vld [vmem:[#allocation5] ss:$24 sps:$4 sm:$0xff]   ;;  %v496_v12 = vpack.c.bf16 %v370_v7, %v368_v6  ;;  %v499_v13 = vpack.c.bf16 %v375_v9, %v373_v8  ;;  %v377_v16 = vld [vmem:[%s1408_s26 + $0x448] sm:$0xff]  ;;  %v1073_v19 = vld [vmem:[#allocation5 + $0x3c] ss:$24 sps:$4 sm:$0xff]  }
  0x8a   : > { %683 = vmatprep.subr.bf16.mxu0 %v487_v15  ;;  %v1067_v11 = vld [vmem:[#allocation5 + $0x8] ss:$24 sps:$4 sm:$0xff]   ;;  %v374_v15 = vld [vmem:[%s1408_s26 + $0x430] sm:$0xff]  ;;  %v379_v17 = vld [vmem:[%s1408_s26 + $0x458] sm:$0xff] }
  0x8b   : > { %v1070_v18 = vld [vmem:[#allocation5 + $0x34] ss:$24 sps:$4 sm:$0xff]   ;;  %v376_v21 = vld [vmem:[%s1408_s26 + $0x440] sm:$0xff]  ;;  %v383_v25 = vld [vmem:[%s1408_s26 + $0x478] sm:$0xff] }
  0x8c   : > { %631 = vmatpush1.bf16.msra.mxu1 %v454_v20  ;;  %v498_v20 = vpack.c.bf16 %v374_v15, %v372_v14  ;;  %v381_v24 = vld [vmem:[%s1408_s26 + $0x468] sm:$0xff]  ;;  %v1075_v28 = vld [vmem:[#allocation5 + $0x38] ss:$24 sps:$4 sm:$0xff]   ;;  %v236_v29 = vld [vmem:[%s1691_s2] sm:$0xff] }
  0x8d   : > { %684 = vmatpush1.bf16.msra.mxu0 %v486_v22  ;;  %632 = vmatprep.subr.bf16.mxu1 %v457_v23  ;;  %v501_v22 = vpack.c.bf16 %v379_v17, %v377_v16  ;;  %v378_v23 = vld [vmem:[%s1408_s26 + $0x450] sm:$0xff]  ;;  %v503_v31 = vpack.c.bf16 %v383_v25, %v381_v24  ;;  %v380_v32 = vld [vmem:[%s1408_s26 + $0x460] sm:$0xff]  ;;  %v239_v43 = vld [vmem:[%s1691_s2 + $0x18] sm:$0xff] }
  0x8e   : > { %685 = vmatprep.subr.bf16.mxu0 %v489_v27  ;;  %v1072_v26 = vld [vmem:[#allocation5 + $0x30] ss:$24 sps:$4 sm:$0xff]   ;;  %v500_v27 = vpack.c.bf16 %v378_v23, %v376_v21  ;;  %v1078_v36 = vld [vmem:[#allocation5 + $0x14] ss:$24 sps:$4 sm:$0xff]   ;;  %530 = vperm.xlu1 %1063, %v236_v29   ;;  %v1081_v37 = vld [vmem:[#allocation5 + $0x44] ss:$24 sps:$4 sm:$0xff]  }
  0x8f   : > { %v238_v30 = vld [vmem:[%s1691_s2 + $0x10] sm:$0xff]  ;;  %v384_v41 = vld [vmem:[%s1408_s26 + $0x480] sm:$0xff]  ;;  %v389_v44 = vld [vmem:[%s1408_s26 + $0x4a8] sm:$0xff] }
  0x90   : > { %633 = vmatpush1.bf16.msra.mxu1 %v456_v33  ;;  %v382_v33 = vld [vmem:[%s1408_s26 + $0x470] sm:$0xff]  ;;  %540 = vperm.xlu0 %1062, %v238_v30   ;;  %v388_v48 = vld [vmem:[%s1408_s26 + $0x4a0] sm:$0xff]  ;;  %v393_v50 = vld [vmem:[%s1408_s26 + $0x4c8] sm:$0xff] }
  0x91   : > { %686 = vmatpush1.bf16.msra.mxu0 %v488_v34  ;;  %634 = vmatprep.subr.bf16.mxu1 %v459_v35  ;;  %v385_v34 = vld [vmem:[%s1408_s26 + $0x488] sm:$0xff]  ;;  %v387_v35 = vld [vmem:[%s1408_s26 + $0x498] sm:$0xff]  ;;  %v502_v38 = vpack.c.bf16 %v382_v33, %v380_v32  ;;  %v386_v42 = vld [vmem:[%s1408_s26 + $0x490] sm:$0xff] }
  0x92   : > { %687 = vmatprep.subr.bf16.mxu0 %v491_v39  ;;  %v237_v39 = vld [vmem:[%s1691_s2 + $0x8] sm:$0xff]  ;;  %v505_v40 = vpack.c.bf16 %v387_v35, %v385_v34  ;;  %v390_v49 = vld [vmem:[%s1408_s26 + $0x4b0] sm:$0xff]  ;;  %v392_v54 = vld [vmem:[%s1408_s26 + $0x4c0] sm:$0xff] }
  0x93   : > { %535 = vperm.xlu1 %1063, %v237_v39   ;;  %v506_v52 = vpack.c.bf16 %v390_v49, %v388_v48  ;;  %v394_v55 = vld [vmem:[%s1408_s26 + $0x4d0] sm:$0xff]  ;;  %v397_v56 = vld [vmem:[%s1408_s26 + $0x4e8] sm:$0xff]  ;;  %v396_v60 = vld [vmem:[%s1408_s26 + $0x4e0] sm:$0xff] }
  0x94   : > { %635 = vmatpush1.bf16.msra.mxu1 %v458_v45  ;;  %v391_v45 = vld [vmem:[%s1408_s26 + $0x4b8] sm:$0xff]  ;;  %545 = vperm.xlu0 %1062, %v239_v43   ;;  %v398_v61 = vld [vmem:[%s1408_s26 + $0x4f0] sm:$0xff]  ;;  %v401_v62 = vld [vmem:[%s1408_s26 + $0x508] sm:$0xff] }
  0x95   : > { %688 = vmatpush1.bf16.msra.mxu0 %v490_v46  ;;  %636 = vmatprep.subr.bf16.mxu1 %v461_v47  ;;  %v504_v46 = vpack.c.bf16 %v386_v42, %v384_v41  ;;  %v507_v47 = vpack.c.bf16 %v391_v45, %v389_v44  ;;  %v510_v0 = vpack.c.bf16 %v398_v61, %v396_v60  ;;  %v400_v2 = vld [vmem:[%s1408_s26 + $0x500] sm:$0xff]  ;;  %v406_v9 = vld [vmem:[%s1408_s26 + $0x530] sm:$0xff]  ;;  %v413_v16 = vld [vmem:[%s1408_s26 + $0x568] sm:$0xff] }
  0x96   : > { %689 = vmatprep.subr.bf16.mxu0 %v493_v51  ;;  %v395_v51 = vld [vmem:[%s1408_s26 + $0x4d8] sm:$0xff]  ;;  %v404_v8 = vld [vmem:[%s1408_s26 + $0x520] sm:$0xff]  ;;  %v410_v15 = vld [vmem:[%s1408_s26 + $0x550] sm:$0xff] }
  0x97   : > { %v509_v53 = vpack.c.bf16 %v395_v51, %v393_v50  ;;  %v408_v14 = vld [vmem:[%s1408_s26 + $0x540] sm:$0xff]  ;;  %v415_v17 = vld [vmem:[%s1408_s26 + $0x578] sm:$0xff]  ;;  %v414_v21 = vld [vmem:[%s1408_s26 + $0x570] sm:$0xff] }
  0x98   : > { %637 = vmatpush1.bf16.msra.mxu1 %v460_v57  ;;  %v399_v57 = vld [vmem:[%s1408_s26 + $0x4f8] sm:$0xff]  ;;  %v420_v32 = vld [vmem:[%s1408_s26 + $0x5a0] sm:$0xff]  ;;  %v422_v33 = vld [vmem:[%s1408_s26 + $0x5b0] sm:$0xff] }
  0x99   : > { %690 = vmatpush1.bf16.msra.mxu0 %v492_v58  ;;  %638 = vmatprep.subr.bf16.mxu1 %v463_v59  ;;  %v508_v58 = vpack.c.bf16 %v394_v55, %v392_v54  ;;  %v511_v59 = vpack.c.bf16 %v399_v57, %v397_v56  ;;  %v419_v23 = vld [vmem:[%s1408_s26 + $0x598] sm:$0xff]  ;;  %v425_v34 = vld [vmem:[%s1408_s26 + $0x5c8] sm:$0xff]  ;;  %v426_v39 = vld [vmem:[%s1408_s26 + $0x5d0] sm:$0xff] }
  0x9a   : > { %691 = vmatprep.subr.bf16.mxu0 %v495_v63  ;;  %v403_v63 = vld [vmem:[%s1408_s26 + $0x518] sm:$0xff]  ;;  %v428_v44 = vld [vmem:[%s1408_s26 + $0x5e0] sm:$0xff]  ;;  %v430_v45 = vld [vmem:[%s1408_s26 + $0x5f0] sm:$0xff] }
  0x9b   : > { %v513_v1 = vpack.c.bf16 %v403_v63, %v401_v62  ;;  %v423_v29 = vld [vmem:[%s1408_s26 + $0x5b8] sm:$0xff]  ;;  %v1076_v48 = vld [vmem:[#allocation5 + $0x10] ss:$24 sps:$4 sm:$0xff]  }
  0x9c   : > { %639 = vmatpush1.bf16.msra.mxu1 %v462_v3  ;;  %v402_v3 = vld [vmem:[%s1408_s26 + $0x510] sm:$0xff]  ;;  %v427_v35 = vld [vmem:[%s1408_s26 + $0x5d8] sm:$0xff] }
  0x9d   : > { %692 = vmatpush1.bf16.msra.mxu0 %v494_v4  ;;  %923 = vmatprep.subr.bf16.mxu1 %v497_v5  ;;  %v405_v4 = vld [vmem:[%s1408_s26 + $0x528] sm:$0xff]  ;;  %v512_v6 = vpack.c.bf16 %v402_v3, %v400_v2  ;;  %v431_v41 = vld [vmem:[%s1408_s26 + $0x5f8] sm:$0xff] }
  0x9e   : > { %714 = vmatprep.subr.bf16.mxu0 %v497_v5  ;;  %v407_v5 = vld [vmem:[%s1408_s26 + $0x538] sm:$0xff] }
  0x9f   : > { %641 = vmatmul.mubr.bf16.vlgmr.msra.gmra.mrb[0].mxu1 %v1064_v10  ;;  %v515_v7 = vpack.c.bf16 %v407_v5, %v405_v4  ;;  %v409_v10 = vld [vmem:[%s1408_s26 + $0x548] sm:$0xff] }
  0xa0   : > { %694 = vmatmul.mubr.bf16.vlgmr.msra.gmra.mrb[0].mxu0 %v1067_v11  ;;  %939 = vmatpush1.bf16.msra.mxu1 %v496_v12  ;;  %v411_v11 = vld [vmem:[%s1408_s26 + $0x558] sm:$0xff] }
  0xa1   : > { %715 = vmatpush1.bf16.msra.mxu0 %v496_v12  ;;  %924 = vmatprep.subr.bf16.mxu1 %v499_v13  ;;  %v514_v12 = vpack.c.bf16 %v406_v9, %v404_v8 }
  0xa2   : > { %716 = vmatprep.subr.bf16.mxu0 %v499_v13  ;;  %650 = vmatprep.mubr.bf16.mxu1 %v1070_v18  ;;  %v517_v13 = vpack.c.bf16 %v411_v11, %v409_v10  ;;  %v516_v18 = vpack.c.bf16 %v410_v15, %v408_v14 }
  0xa3   : > { %703 = vmatprep.mubr.bf16.mxu0 %v1073_v19  ;;  %v519_v19 = vpack.c.bf16 %v415_v17, %v413_v16 }
  0xa4   : > { %940 = vmatpush1.bf16.msra.mxu1 %v498_v20 }
  0xa5   : > { %717 = vmatpush1.bf16.msra.mxu0 %v498_v20  ;;  %925 = vmatprep.subr.bf16.mxu1 %v501_v22  ;;  %v412_v20 = vld [vmem:[%s1408_s26 + $0x560] sm:$0xff] }
  0xa6   : > { %718 = vmatprep.subr.bf16.mxu0 %v501_v22  ;;  %v417_v22 = vld [vmem:[%s1408_s26 + $0x588] sm:$0xff]  ;;  %v518_v24 = vpack.c.bf16 %v414_v21, %v412_v20 }
  0xa7   : > { %651 = vmatmul.mubr.bf16.gmra.mrb[4].mxu1 %v1072_v26  ;;  %v521_v25 = vpack.c.bf16 %v419_v23, %v417_v22  ;;  %v416_v26 = vld [vmem:[%s1408_s26 + $0x580] sm:$0xff] }
  0xa8   : > { %941 = vmatpush1.bf16.msra.mxu1 %v500_v27  ;;  %704 = vmatmul.mubr.bf16.gmra.mrb[4].mxu0 %v1075_v28  ;;  %v421_v28 = vld [vmem:[%s1408_s26 + $0x5a8] sm:$0xff] }
  0xa9   : > { %719 = vmatpush1.bf16.msra.mxu0 %v500_v27  ;;  %926 = vmatprep.subr.bf16.mxu1 %v503_v31  ;;  %v418_v27 = vld [vmem:[%s1408_s26 + $0x590] sm:$0xff] }
  0xaa   : > { %720 = vmatprep.subr.bf16.mxu0 %v503_v31  ;;  %746 = vmatprep.mubr.bf16.mxu0 %v1078_v36  ;;  %v520_v30 = vpack.c.bf16 %v418_v27, %v416_v26  ;;  %v523_v31 = vpack.c.bf16 %v423_v29, %v421_v28  ;;  %v522_v36 = vpack.c.bf16 %v422_v33, %v420_v32 }
  0xab   : > { %756 = vmatprep.mubr.bf16.mxu1 %v1081_v37  ;;  %v525_v37 = vpack.c.bf16 %v427_v35, %v425_v34 }
  0xac   : > { %942 = vmatpush1.bf16.msra.mxu1 %v502_v38 }
  0xad   : > { %721 = vmatpush1.bf16.msra.mxu0 %v502_v38  ;;  %927 = vmatprep.subr.bf16.mxu1 %v505_v40  ;;  %v424_v38 = vld [vmem:[%s1408_s26 + $0x5c0] sm:$0xff] }
  0xae   : > { %722 = vmatprep.subr.bf16.mxu0 %v505_v40  ;;  %v429_v40 = vld [vmem:[%s1408_s26 + $0x5e8] sm:$0xff]  ;;  %v524_v42 = vpack.c.bf16 %v426_v39, %v424_v38  ;;  %s1140_s26 = scalar_lea.vmem %s1627_s21, 1024 }
  0xaf   : > { %v527_v43 = vpack.c.bf16 %v431_v41, %v429_v40  ;;  %p1141_p4 = scmp.ne.s32.totalorder %s1627_s21, %s1140_s26  ;;  %p1148_p13 = scmp.lt.s32.totalorder %s1146_s24, %s1140_s26 }
  0xb0   : > { %943 = vmatpush1.bf16.msra.mxu1 %v504_v46 }
  0xb1   : > { %723 = vmatpush1.bf16.msra.mxu0 %v504_v46  ;;  %928 = vmatprep.subr.bf16.mxu1 %v507_v47  ;;  %v526_v46 = vpack.c.bf16 %v430_v45, %v428_v44  ;;  %p1142_p6 = pnand %p1141_p4, %p1350_p10  ;;  %p1149_p0 = por %p1148_p13, %p1147_p12 }
  0xb2   : > { %724 = vmatprep.subr.bf16.mxu0 %v507_v47  ;;  %v1079_v47 = vld [vmem:[#allocation5 + $0x40] ss:$24 sps:$4 sm:$0xff]  }
  0xb3   : > { %p1143_p8 = pneg %p1142_p6 }
  0xb4   : > { %944 = vmatpush1.bf16.msra.mxu1 %v506_v52 }
  0xb5   : > { %725 = vmatpush1.bf16.msra.mxu0 %v506_v52  ;;  %929 = vmatprep.subr.bf16.mxu1 %v509_v53  ;;  %p1150_p5 = pnand %p1149_p0, %p1143_p8 }
  0xb6   : > { %726 = vmatprep.subr.bf16.mxu0 %v509_v53 }
  0xb8   : > { %945 = vmatpush1.bf16.msra.mxu1 %v508_v58 }
  0xb9   : > { %727 = vmatpush1.bf16.msra.mxu0 %v508_v58  ;;  %930 = vmatprep.subr.bf16.mxu1 %v511_v59 }
  0xba   : > { %728 = vmatprep.subr.bf16.mxu0 %v511_v59 }
  0xbc   : > { %946 = vmatpush1.bf16.msra.mxu1 %v510_v0 }
  0xbd   : > { %729 = vmatpush1.bf16.msra.mxu0 %v510_v0  ;;  %931 = vmatprep.subr.bf16.mxu1 %v513_v1 }
  0xbe   : > { %730 = vmatprep.subr.bf16.mxu0 %v513_v1 }
  0xc0   : > { %947 = vmatpush1.bf16.msra.mxu1 %v512_v6 }
  0xc1   : > { %731 = vmatpush1.bf16.msra.mxu0 %v512_v6  ;;  %932 = vmatprep.subr.bf16.mxu1 %v515_v7 }
  0xc2   : > { %732 = vmatprep.subr.bf16.mxu0 %v515_v7 }
  0xc4   : > { %948 = vmatpush1.bf16.msra.mxu1 %v514_v12 }
  0xc5   : > { %733 = vmatpush1.bf16.msra.mxu0 %v514_v12  ;;  %933 = vmatprep.subr.bf16.mxu1 %v517_v13 }
  0xc6   : > { %734 = vmatprep.subr.bf16.mxu0 %v517_v13 }
  0xc8   : > { %949 = vmatpush1.bf16.msra.mxu1 %v516_v18 }
  0xc9   : > { %735 = vmatpush1.bf16.msra.mxu0 %v516_v18  ;;  %934 = vmatprep.subr.bf16.mxu1 %v519_v19 }
  0xca   : > { %736 = vmatprep.subr.bf16.mxu0 %v519_v19 }
  0xcc   : > { %950 = vmatpush1.bf16.msra.mxu1 %v518_v24 }
  0xcd   : > { %737 = vmatpush1.bf16.msra.mxu0 %v518_v24  ;;  %935 = vmatprep.subr.bf16.mxu1 %v521_v25 }
  0xce   : > { %738 = vmatprep.subr.bf16.mxu0 %v521_v25 }
  0xd0   : > { %951 = vmatpush1.bf16.msra.mxu1 %v520_v30 }
  0xd1   : > { %739 = vmatpush1.bf16.msra.mxu0 %v520_v30  ;;  %936 = vmatprep.subr.bf16.mxu1 %v523_v31 }
  0xd2   : > { %740 = vmatprep.subr.bf16.mxu0 %v523_v31 }
  0xd4   : > { %952 = vmatpush1.bf16.msra.mxu1 %v522_v36 }
  0xd5   : > { %741 = vmatpush1.bf16.msra.mxu0 %v522_v36  ;;  %937 = vmatprep.subr.bf16.mxu1 %v525_v37 }
  0xd6   : > { %742 = vmatprep.subr.bf16.mxu0 %v525_v37 }
  0xd8   : > { %953 = vmatpush1.bf16.msra.mxu1 %v524_v42 }
  0xd9   : > { %743 = vmatpush1.bf16.msra.mxu0 %v524_v42  ;;  %938 = vmatprep.subr.bf16.mxu1 %v527_v43 }
  0xda   : > { %744 = vmatprep.subr.bf16.mxu0 %v527_v43 }
  0xdc   : > { %954 = vmatpush1.bf16.msra.mxu1 %v526_v46 }
  0xdd   : > { %745 = vmatpush1.bf16.msra.mxu0 %v526_v46 }
  0xdf   : > { %757 = vmatmul.mubr.bf16.vlgmr.msra.gmra.mrb[8].mxu1 %v1079_v47 }
  0xe0   : > { %747 = vmatmul.mubr.bf16.vlgmr.msra.gmra.mrb[0].mxu0 %v1076_v48 }
 0x10d   : > { %v531_v7 = vpop.permute.xlu1 %530 }
 0x10f   : > { %v541_v52 = vpop.permute.xlu0 %540 }
 0x112   : > { %v536_v8 = vpop.permute.xlu1 %535 }
 0x113   : > { %v546_v55 = vpop.permute.xlu0 %545 }
 0x172   : > { %v642_v49 = vpop.f32.mrb[0].mxu1 }
 0x173   : > { %v644_v50 = vpop.f32.mrb[1].mxu1  ;;  %v643_v9 = vadd.f32 %v642_v49, %v531_v7 }
 0x174   : > { %v646_v51 = vpop.f32.mrb[2].mxu1  ;;  %v645_v11 = vadd.f32 %v644_v50, %v531_v7 }
 0x175   : > { %v648_v53 = vpop.f32.mrb[3].mxu1  ;;  %v647_v15 = vadd.f32 %v646_v51, %v536_v8 }
 0x176   : > { %v649_v20 = vadd.f32 %v648_v53, %v536_v8 }
 0x17a   : > { %v652_v54 = vpop.f32.mrb[4].mxu1 }
 0x17b   : > { %v653_v56 = vadd.f32 %v652_v54, %v541_v52  ;;  %v654_v57 = vpop.f32.mrb[5].mxu1  ;;  %v705_v58 = vpop.f32.mrb[4].mxu0 }
 0x17c   : > { %v655_v59 = vadd.f32 %v654_v57, %v541_v52  ;;  %v656_v60 = vpop.f32.mrb[6].mxu1  ;;  %v707_v61 = vpop.f32.mrb[5].mxu0 }
 0x17d   : > { %v706_v62 = vadd.f32 %v705_v58, %v653_v56  ;;  %v657_v63 = vadd.f32 %v656_v60, %v546_v55  ;;  %v658_v0 = vpop.f32.mrb[7].mxu1  ;;  %v709_v1 = vpop.f32.mrb[6].mxu0 }
 0x17e   : > { %v659_v2 = vadd.f32 %v658_v0, %v546_v55  ;;  %v708_v3 = vadd.f32 %v707_v61, %v655_v59  ;;  %v711_v4 = vpop.f32.mrb[7].mxu0 }
 0x17f   : > { %v710_v5 = vadd.f32 %v709_v1, %v657_v63 }
 0x180   : > { %v712_v6 = vadd.f32 %v711_v4, %v659_v2 }
 0x1b2   : > { %v758_v10 = vpop.f32.mrb[8].mxu1 }
 0x1b3   : > { %v748_v12 = vpop.f32.mrb[0].mxu0  ;;  %v759_v13 = vadd.f32 %v758_v10, %v706_v62  ;;  %v760_v14 = vpop.f32.mrb[9].mxu1 }
 0x1b4   : > { %v956_v16 = vadd.f32 %v748_v12, %v643_v9  ;;  %v750_v17 = vpop.f32.mrb[1].mxu0  ;;  %v761_v18 = vadd.f32 %v760_v14, %v708_v3  ;;  %v762_v19 = vpop.f32.mrb[10].mxu1 }
 0x1b5   : > { %v771_v21 = vmax.f32 %v759_v13, 0.0  ;;  %v958_v22 = vadd.f32 %v750_v17, %v645_v11  ;;  %v752_v23 = vpop.f32.mrb[2].mxu0  ;;  %v763_v24 = vadd.f32 %v762_v19, %v710_v5  ;;  %v764_v25 = vpop.f32.mrb[11].mxu1 }
 0x1b6   : > { %v767_v26 = vmax.f32 %v956_v16, 0.0  ;;  %v772_v27 = vmax.f32 %v761_v18, 0.0  ;;  %v960_v28 = vadd.f32 %v752_v23, %v647_v15  ;;  %v754_v29 = vpop.f32.mrb[3].mxu0  ;;  %v765_v30 = vadd.f32 %v764_v25, %v712_v6 }
 0x1b7   : > { %779 = vst [vmem:[%s1623_s9 + $0x20] sm:$0xff] %v771_v21  ;;  %v768_v31 = vmax.f32 %v958_v22, 0.0  ;;  %v773_v32 = vmax.f32 %v763_v24, 0.0  ;;  %v962_v33 = vadd.f32 %v754_v29, %v649_v20 }
 0x1b8   : > { %775 = vst [vmem:[%s1623_s9] sm:$0xff] %v767_v26  ;;  %780 = vst [vmem:[%s1623_s9 + $0x28] sm:$0xff] %v772_v27  ;;  %v769_v34 = vmax.f32 %v960_v28, 0.0  ;;  %v774_v35 = vmax.f32 %v765_v30, 0.0 }
 0x1b9   : > { %776 = vst [vmem:[%s1623_s9 + $0x8] sm:$0xff] %v768_v31  ;;  %781 = vst [vmem:[%s1623_s9 + $0x30] sm:$0xff] %v773_v32  ;;  %v770_v36 = vmax.f32 %v962_v33, 0.0 }
 0x1ba   : > { %777 = vst [vmem:[%s1623_s9 + $0x10] sm:$0xff] %v769_v34  ;;  %782 = vst [vmem:[%s1623_s9 + $0x38] sm:$0xff] %v774_v35 }
 0x1bb   : > { %778 = vst [vmem:[%s1623_s9 + $0x18] sm:$0xff] %v770_v36 }
 0x1bc   : > { %1153 = shalt.err (!%p1150_p5)
}
 0x1bd   : > { %s1154_s7 = scalar_lea.hbm %s1635_s30, 1024  ;;  %s1158_s11 = scalar_lea.hbm %s1692_s3, 2048 }
 0x1be   : > { %p1155_p9 = scmp.ne.s32.totalorder %s1635_s30, %s1154_s7  ;;  %p1159_p3 = scmp.lt.u32.totalorder %s1635_s30, %s1692_s3 }
 0x1bf   : > { %p1160_p7 = scmp.lt.u32.totalorder %s1158_s11, %s1154_s7  ;;  %p1162_p4 = scmp.lt.u32.totalorder %s1154_s7, %s1635_s30 }
 0x1c0   : > { %p1156_p1 = pnand %p1155_p9, %p1350_p10 }
 0x1c1   : > { %p1161_p11 = por %p1160_p7, %p1159_p3 }
 0x1c2   : > { %p1157_p2 = pneg %p1156_p1 }
 0x1c3   : > { %p1163_p6 = por %p1162_p4, %p1161_p11 }
 0x1c5   : > { %p1164_p8 = pnand %p1163_p6, %p1157_p2 }
 0x1c7   : > { %1167 = shalt.err (!%p1164_p8)
}
 0x1c8   : > { %s1236_s9 = smov 256   ;;  %s1237_s18 = smov 16  }
 0x1c9   : > { %988 = dma.vmem_to_hbm [thread:$0]  (%p1350_p10), %s1627_s21, 1024, %s1635_s30, %s784_s4, %s1236_s9, %s1236_s9, %s1237_s18  }
 0x1ca PF: > { %s814_s15 = sand.u32 1, %s1206_s12   ;;  %p1709_p12 = scmp.ne.s32.totalorder %s1700_s23, 0 }
 0x1cb   : > { %p1710_p13 = scmp.ge.s32.totalorder %s1226_s17, 2  ;;  %s815_s19 = scalar_lea.sflag [#allocation4], %s814_s15 }
 0x1cd   : > { %p999_p0 = pnand %p1710_p13, %p1709_p12 }
 0x1cf   : > { %1201 = dma.done.wait (!%p999_p0), %s815_s19, 1024  }
 0x1d0   : > { %1203 = vsyncadd (!%p999_p0), %s815_s19, 4294966272  ;;  %s20_s17 = sadd.s32 1, %s1226_s17   ;;  %s1711_s12 = smov %s1210_s13 }
 0x1d1   : > { %p17_p5 = scmp.ge.s32.totalorder %s20_s17, 4   ;;  %s1712_s13 = smov %s1214_s14 }
 0x1d2   : > { %s1713_s14 = smov %s1359_s5  ;;  %s1714_s15 = smov %s1222_s16 }
 0x1d3   : > { %s1715_s16 = smov %s1717_s28  ;;  %19 = sbr.rel (!%p17_p5) target bundleno = 7 (0x7), region = 81 }
 0x1da   :  { %820 = vsyncpa [#allocation3], 1 }
 0x1db   :  { %822 = vsyncpa [#allocation3 + $0x1], 1 }
 0x1dc   :  { %823 = vsyncpa [#allocation6], 1 }
 0x1dd   :  { %824 = vsyncpa [#allocation4], 1 }
 0x1de   :  { %826 = vsyncpa [#allocation4 + $0x1], 1 }

</bundles_post_ra>
